<compile_context>
chip_gen: v7x
topology: tpu7x:2x2x1
jax: 0.10.0
libtpu: 0.0.40
codegen_flags: <defaults>
</compile_context>

<pallas_src>
import functools

import jax
import jax.numpy as jnp
from jax import lax
from jax.experimental import pallas as pl
from jax.experimental.pallas import tpu as pltpu


D_IN, D_H1, D_H2, D_H4, D_OUT = 24, 36, 20, 8, 1


def _round_up(n, m):
    return ((n + m - 1) // m) * m


def _default_act_dtype():
    """bf16 tanh on v6e/v7x (doubles EUP throughput), f32 on v5e and older."""
    try:
        kind = jax.devices()[0].device_kind.lower()
    except Exception:
        return jnp.float32
    for old in ("v2", "v3", "v4", "v5"):
        if old in kind:
            return jnp.float32
    return jnp.bfloat16


def _netdeeper_kernel(x_ref,
                      w1_ref, b1_ref,
                      w2_ref, b2_ref,
                      w4_ref, b4_ref,
                      wo_ref, bo_ref,
                      o_ref, *, act_dtype):
    x = x_ref[...]                                                  # (BT, 24) natural layout

    # hid1: contract w1 dim1 (24) with x dim1 (24) -> (36, BT). Mosaic feeds the
    # transposed operand to the MXU directly; no VMEM transpose copy, and every
    # downstream activation is feature-major (features, BT) with batch on lanes.
    h = lax.dot_general(w1_ref[...], x, (((1,), (1,)), ((), ())),
                        preferred_element_type=jnp.float32) + b1_ref[...]
    h = jnp.tanh(h.astype(act_dtype))                               # (36, BT)

    h = jnp.dot(w2_ref[...], h, preferred_element_type=jnp.float32) + b2_ref[...]
    h = jnp.tanh(h.astype(act_dtype))                               # (20, BT)

    # hid3 is nn.ReLU, so this stage is tanh(relu(h)) with no weights.
    h = jnp.tanh(jnp.maximum(h, 0.0).astype(act_dtype))             # (20, BT)

    h = jnp.dot(w4_ref[...], h, preferred_element_type=jnp.float32) + b4_ref[...]
    h = jnp.tanh(h.astype(act_dtype))                               # (8, BT)

    # oupt (8 -> 1): K=8/N=1 would waste a full MXU pass; VPU multiply + XLU
    # sublane reduce gives the lane-dense (1, BT) output slab directly.
    z = jnp.sum(h.astype(jnp.float32) * wo_ref[...], axis=0, keepdims=True) \
        + bo_ref[...]                                               # (1, BT)

    # Exact sigmoid: exp lives on the EUP; ~2 EUP ops/elem vs ~84 for tanh, so
    # exactness is free and the f32 path matches the reference to ~1e-5.
    o_ref[...] = 1.0 / (1.0 + jnp.exp(-z))


def netdeeper_forward(x, params, *, b_tile=8192, act_dtype="auto"):
    """x: (B, 24) float32. Returns (B, 1) float32 sigmoid outputs."""
    (w1, b1, w2, b2, w4, b4, wo, bo) = params
    B = x.shape[0]

    if act_dtype == "auto":
        act_dtype = _default_act_dtype()

    # Batch tile: multiple of 128 so the lane (last) dim of the output block is dense.
    bt = min(b_tile, _round_up(max(B, 1), 128))
    b_pad = _round_up(max(B, 1), bt)
    n_tiles = b_pad // bt

    # Natural-layout input; only pad rows when B is not tile-aligned (tiny compared to
    # the old full transposed copy of x).
    if b_pad != B:
        x_in = jnp.zeros((b_pad, D_IN), x.dtype).at[:B].set(x)
    else:
        x_in = x

    wo_col = wo.reshape(D_H4, D_OUT)      # (8, 1): same data as torch oupt.weight
    consts = (w1, b1, w2, b2, w4, b4, wo_col, bo)   # weights stay f32; MXU accumulates f32

    flops = 2 * b_pad * (D_IN * D_H1 + D_H1 * D_H2 + D_H2 * D_H4 + D_H4 * D_OUT)
    transcendentals = b_pad * (D_H1 + D_H2 + D_H2 + D_H4 + 1)
    bytes_accessed = (x_in.size * x_in.dtype.itemsize          # real (B, 24) read
                      + b_pad * 4                              # (1, B) f32 output
                      + sum(int(c.size) * c.dtype.itemsize for c in consts))

    out_t = pl.pallas_call(
        functools.partial(_netdeeper_kernel, act_dtype=act_dtype),
        out_shape=jax.ShapeDtypeStruct((1, b_pad), jnp.float32),
        grid=(n_tiles,),
        in_specs=[pl.BlockSpec((bt, D_IN), lambda i: (i, 0))] +
                 [pl.BlockSpec(c.shape, lambda i: (0, 0)) for c in consts],
        out_specs=pl.BlockSpec((1, bt), lambda i: (0, i)),
        # TODO(synk): on v7x, if xprof shows only one TensorCore busy, switch this axis
        # to pltpu.CORE_PARALLEL (no effect on single-TC v5e/v6e).
        compiler_params=pltpu.CompilerParams(
            dimension_semantics=("parallel",)),
        cost_estimate=pl.CostEstimate(flops=flops,
                                      transcendentals=transcendentals,
                                      bytes_accessed=bytes_accessed),
    )(x_in, *consts)

    # (1, b_pad) lane-dense slab -> (B, 1) column (pure reshape, same element order).
    return out_t.reshape(b_pad, 1)[:B]


def xavier_uniform(key, out_f, in_f):
    # Matches torch.nn.init.xavier_uniform_ (gain=1) on a (out, in) weight.
    bound = (6.0 / (in_f + out_f)) ** 0.5
    return jax.random.uniform(key, (out_f, in_f), jnp.float32, -bound, bound)


def init_params(key):
    k1, k2, k4, ko = jax.random.split(key, 4)
    w1 = xavier_uniform(k1, D_H1, D_IN)          # (36, 24)  == hid1.weight
    b1 = jnp.zeros((D_H1, 1), jnp.float32)
    w2 = xavier_uniform(k2, D_H2, D_H1)          # (20, 36)  == hid2.weight
    b2 = jnp.zeros((D_H2, 1), jnp.float32)
    w4 = xavier_uniform(k4, D_H4, D_H2)          # (8, 20)   == hid4.weight
    b4 = jnp.zeros((D_H4, 1), jnp.float32)
    wo = xavier_uniform(ko, D_OUT, D_H4)         # (1, 8)    == oupt.weight
    bo = jnp.zeros((D_OUT, 1), jnp.float32)
    return (w1, b1, w2, b2, w4, b4, wo, bo)


def reference_forward(x, params):
    (w1, b1, w2, b2, w4, b4, wo, bo) = params
    h = jnp.tanh(x @ w1.T + b1.T)
    h = jnp.tanh(h @ w2.T + b2.T)
    h = jnp.tanh(jnp.maximum(h, 0.0))
    h = jnp.tanh(h @ w4.T + b4.T)
    return jax.nn.sigmoid(h @ wo.T + bo.T)


if __name__ == "__main__":
    key = jax.random.PRNGKey(0)
    kx, kp = jax.random.split(key)
    batch = 8
    x = jax.random.normal(kx, (batch, D_IN), jnp.float32)
    params = init_params(kp)
    ref = reference_forward(x, params)

    # Full-precision path: exact sigmoid + f32 tanh -> tight tolerance.
    out_f32 = jax.block_until_ready(netdeeper_forward(x, params, act_dtype=jnp.float32))
    assert out_f32.shape == (batch, 1)
    assert jnp.allclose(out_f32, ref, atol=1e-4, rtol=0.0), \
        float(jnp.max(jnp.abs(out_f32 - ref)))

    # Default (auto) path: bf16 tanh on v6e/v7x, f32 on v5e.  Loose sanity check only,
    # since bf16 activations carry ~3 significant digits.
    out_auto = jax.block_until_ready(netdeeper_forward(x, params))
    assert out_auto.shape == (batch, 1)
    assert jnp.allclose(out_auto, ref, atol=1e-1, rtol=0.0), \
        float(jnp.max(jnp.abs(out_auto - ref)))

    print("KERNEL_OK")
</pallas_src>

<mosaic_0001>
module attributes {stable_mosaic.version = 11 : i64} {
  func.func @_netdeeper_kernel(%arg0: i32, %arg1: memref<128x24xf32, #tpu.memory_space<vmem>>, %arg2: memref<36x24xf32, #tpu.memory_space<vmem>>, %arg3: memref<36x1xf32, #tpu.memory_space<vmem>>, %arg4: memref<20x36xf32, #tpu.memory_space<vmem>>, %arg5: memref<20x1xf32, #tpu.memory_space<vmem>>, %arg6: memref<8x20xf32, #tpu.memory_space<vmem>>, %arg7: memref<8x1xf32, #tpu.memory_space<vmem>>, %arg8: memref<8x1xf32, #tpu.memory_space<vmem>>, %arg9: memref<1x1xf32, #tpu.memory_space<vmem>>, %arg10: memref<1x128xf32, #tpu.memory_space<vmem>>) attributes {dimension_semantics = [#tpu.dimension_semantics<parallel>], iteration_bounds = array<i64: 1>, scalar_prefetch = 0 : i64, scratch_operands = 0 : i64, tpu.core_type = #tpu.core_type<tc>, window_params = [{transform_indices = @transform_0, window_bounds = array<i64: 128, 24>}, {pipeline_mode = #tpu.pipeline_mode<synchronous>, transform_indices = @transform_1, window_bounds = array<i64: 36, 24>}, {pipeline_mode = #tpu.pipeline_mode<synchronous>, transform_indices = @transform_2, window_bounds = array<i64: 36, 1>}, {pipeline_mode = #tpu.pipeline_mode<synchronous>, transform_indices = @transform_3, window_bounds = array<i64: 20, 36>}, {pipeline_mode = #tpu.pipeline_mode<synchronous>, transform_indices = @transform_4, window_bounds = array<i64: 20, 1>}, {pipeline_mode = #tpu.pipeline_mode<synchronous>, transform_indices = @transform_5, window_bounds = array<i64: 8, 20>}, {pipeline_mode = #tpu.pipeline_mode<synchronous>, transform_indices = @transform_6, window_bounds = array<i64: 8, 1>}, {pipeline_mode = #tpu.pipeline_mode<synchronous>, transform_indices = @transform_7, window_bounds = array<i64: 8, 1>}, {pipeline_mode = #tpu.pipeline_mode<synchronous>, transform_indices = @transform_8, window_bounds = array<i64: 1, 1>}, {transform_indices = @transform_9, window_bounds = array<i64: 1, 128>}]} {
    %c0 = arith.constant 0 : index
    %c0_0 = arith.constant 0 : index
    %0 = vector.load %arg1[%c0, %c0_0] : memref<128x24xf32, #tpu.memory_space<vmem>>, vector<128x24xf32>
    %c0_1 = arith.constant 0 : index
    %c0_2 = arith.constant 0 : index
    %1 = vector.load %arg2[%c0_1, %c0_2] : memref<36x24xf32, #tpu.memory_space<vmem>>, vector<36x24xf32>
    %cst = arith.constant dense<0.000000e+00> : vector<36x128xf32>
    %2 = tpu.matmul %1, %0, %cst {dimension_numbers = #tpu.dot_dimension_numbers<[1], [1], [0], [0], [0, 0, 1, 0], [], []>} : vector<36x24xf32>, vector<128x24xf32>, vector<36x128xf32> -> vector<36x128xf32>
    %c0_3 = arith.constant 0 : index
    %c0_4 = arith.constant 0 : index
    %3 = vector.load %arg3[%c0_3, %c0_4] : memref<36x1xf32, #tpu.memory_space<vmem>>, vector<36x1xf32>
    %4 = vector.broadcast %3 : vector<36x1xf32> to vector<36x128xf32>
    %5 = arith.addf %2, %4 : vector<36x128xf32>
    %6 = math.tanh %5 : vector<36x128xf32>
    %c0_5 = arith.constant 0 : index
    %c0_6 = arith.constant 0 : index
    %7 = vector.load %arg4[%c0_5, %c0_6] : memref<20x36xf32, #tpu.memory_space<vmem>>, vector<20x36xf32>
    %cst_7 = arith.constant dense<0.000000e+00> : vector<20x128xf32>
    %8 = tpu.matmul %7, %6, %cst_7 {dimension_numbers = #tpu.dot_dimension_numbers<[1], [0], [0], [1], [0, 0, 1, 1], [], []>} : vector<20x36xf32>, vector<36x128xf32>, vector<20x128xf32> -> vector<20x128xf32>
    %c0_8 = arith.constant 0 : index
    %c0_9 = arith.constant 0 : index
    %9 = vector.load %arg5[%c0_8, %c0_9] : memref<20x1xf32, #tpu.memory_space<vmem>>, vector<20x1xf32>
    %10 = vector.broadcast %9 : vector<20x1xf32> to vector<20x128xf32>
    %11 = arith.addf %8, %10 : vector<20x128xf32>
    %12 = math.tanh %11 : vector<20x128xf32>
    %cst_10 = arith.constant 0.000000e+00 : f32
    %13 = vector.broadcast %cst_10 : f32 to vector<20x128xf32>
    %14 = arith.maximumf %12, %13 : vector<20x128xf32>
    %15 = math.tanh %14 : vector<20x128xf32>
    %c0_11 = arith.constant 0 : index
    %c0_12 = arith.constant 0 : index
    %16 = vector.load %arg6[%c0_11, %c0_12] : memref<8x20xf32, #tpu.memory_space<vmem>>, vector<8x20xf32>
    %cst_13 = arith.constant dense<0.000000e+00> : vector<8x128xf32>
    %17 = tpu.matmul %16, %15, %cst_13 {dimension_numbers = #tpu.dot_dimension_numbers<[1], [0], [0], [1], [0, 0, 1, 1], [], []>} : vector<8x20xf32>, vector<20x128xf32>, vector<8x128xf32> -> vector<8x128xf32>
    %c0_14 = arith.constant 0 : index
    %c0_15 = arith.constant 0 : index
    %18 = vector.load %arg7[%c0_14, %c0_15] : memref<8x1xf32, #tpu.memory_space<vmem>>, vector<8x1xf32>
    %19 = vector.broadcast %18 : vector<8x1xf32> to vector<8x128xf32>
    %20 = arith.addf %17, %19 : vector<8x128xf32>
    %21 = math.tanh %20 : vector<8x128xf32>
    %c0_16 = arith.constant 0 : index
    %c0_17 = arith.constant 0 : index
    %22 = vector.load %arg8[%c0_16, %c0_17] : memref<8x1xf32, #tpu.memory_space<vmem>>, vector<8x1xf32>
    %23 = vector.broadcast %22 : vector<8x1xf32> to vector<8x128xf32>
    %24 = arith.mulf %21, %23 : vector<8x128xf32>
    %cst_18 = arith.constant dense<0.000000e+00> : vector<128xf32>
    %25 = vector.multi_reduction <add>, %24, %cst_18 [0] : vector<8x128xf32> to vector<128xf32>
    %26 = vector.shape_cast %25 : vector<128xf32> to vector<1x128xf32>
    %c0_19 = arith.constant 0 : index
    %c0_20 = arith.constant 0 : index
    %27 = vector.load %arg9[%c0_19, %c0_20] : memref<1x1xf32, #tpu.memory_space<vmem>>, vector<1x1xf32>
    %28 = vector.broadcast %27 : vector<1x1xf32> to vector<1x128xf32>
    %29 = arith.addf %26, %28 : vector<1x128xf32>
    %cst_21 = arith.constant 0.000000e+00 : f32
    %30 = vector.broadcast %cst_21 : f32 to vector<1x128xf32>
    %31 = arith.subf %30, %29 : vector<1x128xf32>
    %32 = math.exp %31 : vector<1x128xf32>
    %cst_22 = arith.constant 1.000000e+00 : f32
    %33 = vector.broadcast %cst_22 : f32 to vector<1x128xf32>
    %34 = arith.addf %33, %32 : vector<1x128xf32>
    %cst_23 = arith.constant 1.000000e+00 : f32
    %35 = vector.broadcast %cst_23 : f32 to vector<1x128xf32>
    %36 = arith.divf %35, %34 : vector<1x128xf32>
    %c0_24 = arith.constant 0 : index
    %c0_25 = arith.constant 0 : index
    %37 = vector.load %arg10[%c0_24, %c0_25] : memref<1x128xf32, #tpu.memory_space<vmem>>, vector<1x128xf32>
    tpu.vector_store %arg10[%c0_24, %c0_25], %36 {strides = array<i32>} : memref<1x128xf32, #tpu.memory_space<vmem>>, vector<1x128xf32>,
    return
  }
  func.func @transform_0(%arg0: i32) -> (i32, i32) {
    %c0_i32 = arith.constant 0 : i32
    %c0_i32_0 = arith.constant 0 : i32
    return %arg0, %c0_i32 : i32, i32
  }
  func.func @transform_1(%arg0: i32) -> (i32, i32) {
    %c0_i32 = arith.constant 0 : i32
    %c0_i32_0 = arith.constant 0 : i32
    %c0_i32_1 = arith.constant 0 : i32
    return %c0_i32, %c0_i32_0 : i32, i32
  }
  func.func @transform_2(%arg0: i32) -> (i32, i32) {
    %c0_i32 = arith.constant 0 : i32
    %c0_i32_0 = arith.constant 0 : i32
    %c0_i32_1 = arith.constant 0 : i32
    return %c0_i32, %c0_i32_0 : i32, i32
  }
  func.func @transform_3(%arg0: i32) -> (i32, i32) {
    %c0_i32 = arith.constant 0 : i32
    %c0_i32_0 = arith.constant 0 : i32
    %c0_i32_1 = arith.constant 0 : i32
    return %c0_i32, %c0_i32_0 : i32, i32
  }
  func.func @transform_4(%arg0: i32) -> (i32, i32) {
    %c0_i32 = arith.constant 0 : i32
    %c0_i32_0 = arith.constant 0 : i32
    %c0_i32_1 = arith.constant 0 : i32
    return %c0_i32, %c0_i32_0 : i32, i32
  }
  func.func @transform_5(%arg0: i32) -> (i32, i32) {
    %c0_i32 = arith.constant 0 : i32
    %c0_i32_0 = arith.constant 0 : i32
    %c0_i32_1 = arith.constant 0 : i32
    return %c0_i32, %c0_i32_0 : i32, i32
  }
  func.func @transform_6(%arg0: i32) -> (i32, i32) {
    %c0_i32 = arith.constant 0 : i32
    %c0_i32_0 = arith.constant 0 : i32
    %c0_i32_1 = arith.constant 0 : i32
    return %c0_i32, %c0_i32_0 : i32, i32
  }
  func.func @transform_7(%arg0: i32) -> (i32, i32) {
    %c0_i32 = arith.constant 0 : i32
    %c0_i32_0 = arith.constant 0 : i32
    %c0_i32_1 = arith.constant 0 : i32
    return %c0_i32, %c0_i32_0 : i32, i32
  }
  func.func @transform_8(%arg0: i32) -> (i32, i32) {
    %c0_i32 = arith.constant 0 : i32
    %c0_i32_0 = arith.constant 0 : i32
    %c0_i32_1 = arith.constant 0 : i32
    return %c0_i32, %c0_i32_0 : i32, i32
  }
  func.func @transform_9(%arg0: i32) -> (i32, i32) {
    %c0_i32 = arith.constant 0 : i32
    %c0_i32_0 = arith.constant 0 : i32
    return %c0_i32, %arg0 : i32, i32
  }
}

</mosaic_0001>

<bundles_post_ra>
// kernel: tpu_custom_call.1
= control target key start
LH: loop header
LB: loop body
LE: loop exit
PB: predicated region body
PF: predicated region fallthrough
CT: control target
= control target key end

     0   :  { %s969_s0 = inlined_call_operand.vmem [shape: f32[128,24], index: 0, kind: input, shape index: {}]   ;;  %s970_s1 = inlined_call_operand.vmem [shape: f32[36,24], index: 1, kind: input, shape index: {}]   ;;  %s971_s2 = inlined_call_operand.vmem [shape: f32[36,1], index: 2, kind: input, shape index: {}]   ;;  %s972_s3 = inlined_call_operand.vmem [shape: f32[20,36], index: 3, kind: input, shape index: {}]   ;;  %s973_s4 = inlined_call_operand.vmem [shape: f32[20,1], index: 4, kind: input, shape index: {}]   ;;  %s974_s5 = inlined_call_operand.vmem [shape: f32[8,20], index: 5, kind: input, shape index: {}]   ;;  %s975_s6 = inlined_call_operand.vmem [shape: f32[8,1], index: 6, kind: input, shape index: {}]   ;;  %s976_s7 = inlined_call_operand.vmem [shape: f32[8,1], index: 7, kind: input, shape index: {}]   ;;  %s977_s8 = inlined_call_operand.<no memory space> [shape: f32[1,1], index: 8, kind: input, shape index: {}]   ;;  %s978_s9 = inlined_call_operand.hbm [shape: f32[1,128], index: 9, kind: output, shape index: {}]  }
   0x1   :  { %v14_v0 = vstv %s977_s8 }
   0x2   :  { %15 = vst [vmem:[#allocation2] sm:$0x1] %v14_v0 }
   0x3   :  { %v35_v1 = vld [vmem:[%s969_s0] sm:$0xff]  ;;  %v36_v2 = vld [vmem:[%s969_s0 + $0x8] sm:$0xff]  ;;  %vm86_vm0 = vcmask 195584   ;;  %v734_v3 = vmov 0.0|0.0   ;;  %vm735_vm2 = vmmov 0   ;;  %v736_v6 = vmov 0.0  }
   0x4   :  { %634 = vmatprep.subr.bf16.mxu0 %v734_v3  ;;  %v635_v4 = vpack.c.bf16 %v36_v2, %v35_v1  ;;  %vm801_vm1 = vmpackc.low %vm86_vm0, %vm86_vm0  ;;  %666 = vmatprep.subr.bf16.mxu1 %v734_v3  ;;  %v737_v7 = vmov 0   ;;  %v37_v8 = vld [vmem:[%s969_s0 + $0x10] sm:$0xff]  ;;  %v38_v9 = vld [vmem:[%s969_s0 + $0x18] sm:$0xff] }
   0x5   :  { %591 = vmatprep.mubr.msk.f32.mxu0 %vm735_vm2, %v736_v6  ;;  %680 = vset.pattern.permute.xlu0 %v737_v7  ;;  %v639_v10 = vpack.c.bf16 %v38_v9, %v37_v8  ;;  %v56_v11 = vld [vmem:[%s971_s2] sm:$0xff]  ;;  %v58_v12 = vld [vmem:[%s971_s2 + $0x10] sm:$0xff]  ;;  %v57_v13 = vld [vmem:[%s971_s2 + $0x8] sm:$0xff] }
   0x6   :  { %637 = vmatpush3.bf16.xpose.msk.msra.mxu0 %vm801_vm1, %v635_v4  ;;  %681 = vset.pattern.permute.xlu1 %v737_v7  ;;  %v59_v14 = vld [vmem:[%s971_s2 + $0x18] sm:$0xff] }
   0x7   :  { %638 = vmatprep.subr.bf16.mxu0 %v734_v3  ;;  %616 = vmatprep.mubr.msk.f32.mxu1 %vm735_vm2, %v736_v6 }
   0x8   :  { %63 = vperm.xlu0 %680, %v56_v11   ;;  %73 = vperm.xlu1 %681, %v58_v12  }
   0xe   :  { %641 = vmatpush3.bf16.xpose.msk.msra.mxu0 %vm801_vm1, %v639_v10 }
   0xf   :  { %16 = vsyncpa [#allocation4], 0  ;;  %642 = vmatprep.subr.bf16.mxu0 %v734_v3  ;;  %v39_v15 = vld [vmem:[%s969_s0 + $0x20] sm:$0xff]  ;;  %v40_v16 = vld [vmem:[%s969_s0 + $0x28] sm:$0xff]  ;;  %68 = vperm.xlu0 %680, %v57_v13   ;;  %vm276_vm3 = vcmask 1043456   ;;  %vm266_vm4 = vcmask 293888  }
  0x10   :  { %v60_v17 = vld [vmem:[%s971_s2 + $0x20] sm:$0xf]  ;;  %78 = vperm.xlu1 %681, %v59_v14   ;;  %v643_v19 = vpack.c.bf16 %v40_v16, %v39_v15  ;;  %v249_v20 = vld [vmem:[%s973_s4 + $0x8] sm:$0xff]  ;;  %v250_v21 = vld [vmem:[%s973_s4 + $0x10] sm:$0xf]  ;;  %vm376_vm5 = vcmask 162816  }
  0x11   :  { %v248_v18 = vld [vmem:[%s973_s4] sm:$0xff]  ;;  %v41_v22 = vld [vmem:[%s969_s0 + $0x30] sm:$0xff]  ;;  %v42_v23 = vld [vmem:[%s969_s0 + $0x38] sm:$0xff] }
  0x12   :  { %v370_v24 = vld [vmem:[%s975_s6] sm:$0xff]  ;;  %v647_v26 = vpack.c.bf16 %v42_v23, %v41_v22  ;;  %v44_v29 = vld [vmem:[%s969_s0 + $0x48] sm:$0xff]  ;;  %v45_v31 = vld [vmem:[%s969_s0 + $0x50] sm:$0xff] }
  0x13   :  { %83 = vperm.xlu0 %680, %v60_v17   ;;  %v454_v25 = vld [vmem:[%s976_s7] sm:$0xff]  ;;  %v46_v32 = vld [vmem:[%s969_s0 + $0x58] sm:$0xff]  ;;  %v48_v35 = vld [vmem:[%s969_s0 + $0x68] sm:$0xff] }
  0x14   :  { %253 = vperm.xlu1 %681, %v248_v18   ;;  %v467_v27 = vld [vmem:[#allocation2] sm:$0x1]  ;;  %v655_v33 = vpack.c.bf16 %v46_v32, %v45_v31  ;;  %v49_v37 = vld [vmem:[%s969_s0 + $0x70] sm:$0xff]  ;;  %v50_v38 = vld [vmem:[%s969_s0 + $0x78] sm:$0xff] }
  0x15   :  { %v43_v28 = vld [vmem:[%s969_s0 + $0x40] sm:$0xff]  ;;  %v663_v39 = vpack.c.bf16 %v50_v38, %v49_v37  ;;  %v52_v41 = vld [vmem:[%s970_s1 + $0x8] sm:$0xff]  ;;  %v53_v42 = vld [vmem:[%s970_s1 + $0x10] sm:$0xff] }
  0x16   :  { %645 = vmatpush3.bf16.xpose.msk.msra.mxu0 %vm801_vm1, %v643_v19  ;;  %v651_v30 = vpack.c.bf16 %v44_v29, %v43_v28  ;;  %v47_v34 = vld [vmem:[%s969_s0 + $0x60] sm:$0xff]  ;;  %v54_v43 = vld [vmem:[%s970_s1 + $0x18] sm:$0xff]  ;;  %v246_v11 = vld [vmem:[%s972_s3 + $0x8] sm:$0xff] }
  0x17   :  { %646 = vmatprep.subr.bf16.mxu0 %v734_v3  ;;  %258 = vperm.xlu0 %680, %v249_v20   ;;  %v659_v36 = vpack.c.bf16 %v48_v35, %v47_v34  ;;  %v51_v40 = vld [vmem:[%s970_s1] sm:$0xff]  ;;  %v247_v12 = vld [vmem:[%s972_s3 + $0x10] sm:$0xf] }
  0x18   :  { %263 = vperm.xlu1 %681, %v250_v21   ;;  %v55_v44 = vld [vmem:[%s970_s1 + $0x20] sm:$0xf] }
  0x19   :  { %v245_v9 = vld [vmem:[%s972_s3] sm:$0xff] }
  0x1b   :  { %373 = vperm.xlu0 %680, %v370_v24  }
  0x1c   :  { %457 = vperm.xlu1 %681, %v454_v25  }
  0x1e   :  { %649 = vmatpush3.bf16.xpose.msk.msra.mxu0 %vm801_vm1, %v647_v26 }
  0x1f   :  { %650 = vmatprep.subr.bf16.mxu0 %v734_v3  ;;  %470 = vperm.xlu0 %680, %v467_v27  }
  0x26   :  { %653 = vmatpush3.bf16.xpose.msk.msra.mxu0 %vm801_vm1, %v651_v30 }
  0x27   :  { %654 = vmatprep.subr.bf16.mxu0 %v734_v3 }
  0x2e   :  { %657 = vmatpush3.bf16.xpose.msk.msra.mxu0 %vm801_vm1, %v655_v33  ;;  %v369_v33 = vld [vmem:[%s974_s5] sm:$0xff]  ;;  %s738_s5 = smov [#allocation3]  }
  0x2f   :  { %658 = vmatprep.subr.bf16.mxu0 %v734_v3  ;;  %s491_s25 = sshll.u32 %s738_s5, 4  ;;  %s492_s25 = int_to_ptr.vmem [resolvable:$true] %s491_s25 }
  0x30   :  { %s710_s26 = scalar_lea.vmem %s492_s25, 16  ;;  %s714_s27 = scalar_lea.vmem %s492_s25, 32 }
  0x31   :  { %p711_p0 = scmp.ne.s32.totalorder %s492_s25, %s710_s26  ;;  %p715_p1 = scmp.lt.s32.totalorder %s492_s25, %s492_s25 }
  0x32   :  { %p716_p2 = scmp.lt.s32.totalorder %s714_s27, %s710_s26 }
  0x34   :  { %p717_p3 = por %p716_p2, %p715_p1 }
  0x36   :  { %661 = vmatpush3.bf16.xpose.msk.msra.mxu0 %vm801_vm1, %v659_v36  ;;  %p718_p4 = pnand %p717_p3, %p711_p0 }
  0x37   :  { %662 = vmatprep.subr.bf16.mxu0 %v734_v3 }
  0x3e   :  { %665 = vmatpush3.bf16.xpose.msk.msra.mxu0 %vm801_vm1, %v663_v39 }
  0x45   :  { %592 = vmatmul.mubr.msk.f32.vlgmr.msra.gmra.mrb[0].mxu0 %vm86_vm0, %v51_v40 }
  0x46   :  { %594 = vmatprep.mubr.msk.f32.mxu0 %vm735_vm2, %v736_v6 }
  0x49   :  { %595 = vmatmul.mubr.msk.f32.gmra.mrb[2].mxu0 %vm86_vm0, %v52_v41  ;;  %v473_v41 = vlaneseq }
  0x4a   :  { %597 = vmatprep.mubr.msk.f32.mxu0 %vm735_vm2, %v736_v6 }
  0x4d   :  { %598 = vmatmul.mubr.msk.f32.gmra.mrb[4].mxu0 %vm86_vm0, %v53_v42 }
  0x4e   :  { %600 = vmatprep.mubr.msk.f32.mxu0 %vm735_vm2, %v736_v6 }
  0x51   :  { %601 = vmatmul.mubr.msk.f32.gmra.mrb[6].mxu0 %vm86_vm0, %v54_v43 }
  0x52   :  { %603 = vmatprep.mubr.msk.f32.mxu0 %vm735_vm2, %v736_v6 }
  0x55   :  { %604 = vmatmul.mubr.msk.f32.gmra.mrb[8].mxu0 %vm86_vm0, %v55_v44 }
  0x87   :  { %v64_v45 = vpop.permute.xlu0 %63  ;;  %v74_v53 = vpop.permute.xlu1 %73 }
  0x8e   :  { %v69_v49 = vpop.permute.xlu0 %68 }
  0x8f   :  { %v79_v57 = vpop.permute.xlu1 %78 }
  0x92   :  { %v84_v62 = vpop.permute.xlu0 %83 }
  0x96   :  { %v259_v16 = vpop.permute.xlu0 %258 }
  0x9a   :  { %v374_v35 = vpop.permute.xlu0 %373 }
 0x118   :  { %v216_v46 = vpop.f32.mrb[0].mxu0 }
 0x119   :  { %v593_v47 = vpop.f32.mrb[1].mxu0  ;;  %v217_v48 = vadd.f32 %v216_v46, %v64_v45 }
 0x11b   :  { %682 = vtanh.f32 %v217_v48  ;;  %v471_v48 = vpop.permute.xlu0 %470 }
 0x11c   :  { %v221_v50 = vpop.f32.mrb[2].mxu0 }
 0x11d   :  { %v222_v51 = vadd.f32 %v221_v50, %v69_v49  ;;  %v596_v52 = vpop.f32.mrb[3].mxu0 }
 0x11f   :  { %684 = vtanh.f32 %v222_v51 }
 0x120   :  { %v226_v54 = vpop.f32.mrb[4].mxu0 }
 0x121   :  { %v599_v55 = vpop.f32.mrb[5].mxu0  ;;  %v227_v56 = vadd.f32 %v226_v54, %v74_v53 }
 0x123   :  { %686 = vtanh.f32 %v227_v56 }
 0x124   :  { %v231_v58 = vpop.f32.mrb[6].mxu0 }
 0x125   :  { %v232_v59 = vadd.f32 %v231_v58, %v79_v57  ;;  %v602_v60 = vpop.f32.mrb[7].mxu0  ;;  %v683_v61 = vpop.eup %682 }
 0x127   :  { %688 = vtanh.f32 %v232_v59 }
 0x128   :  { %v236_v63 = vpop.f32.mrb[8].mxu0 }
 0x129   :  { %v685_v0 = vpop.eup %684  ;;  %v237_v1 = vadd.f32 %v236_v63, %v84_v62  ;;  %v605_v2 = vpop.f32.mrb[9].mxu0 }
 0x12a   :  { %v667_v4 = vpack.c.bf16 %v685_v0, %v683_v61 }
 0x12b   :  { %690 = vtanh.f32 %v237_v1 }
 0x12c   :  { %668 = vmatpush3.bf16.msra.mxu1 %v667_v4 }
 0x12d   :  { %669 = vmatprep.subr.bf16.mxu1 %v734_v3  ;;  %v687_v5 = vpop.eup %686 }
 0x131   :  { %v689_v7 = vpop.eup %688 }
 0x132   :  { %v670_v8 = vpack.c.bf16 %v689_v7, %v687_v5 }
 0x134   :  { %671 = vmatpush3.bf16.msra.mxu1 %v670_v8 }
 0x135   :  { %614 = vmatprep.subr.mxu1 %v736_v6  ;;  %v691_v10 = vpop.eup %690 }
 0x138   :  { %615 = vmatpush3.msk.msra.mxu1 %vm276_vm3, %v691_v10 }
 0x139   :  { %617 = vmatmul.mubr.msk.f32.vlgmr.msra.gmra.mrb[0].mxu1 %vm266_vm4, %v245_v9  ;;  %672 = vmatprep.subr.bf16.mxu1 %v734_v3  ;;  %v254_v3 = vpop.permute.xlu1 %253 }
 0x13a   :  { %619 = vmatprep.mubr.msk.f32.mxu1 %vm735_vm2, %v736_v6 }
 0x13d   :  { %620 = vmatmul.mubr.msk.f32.gmra.mrb[2].mxu1 %vm266_vm4, %v246_v11  ;;  %v264_v20 = vpop.permute.xlu1 %263 }
 0x13e   :  { %622 = vmatprep.mubr.msk.f32.mxu1 %vm735_vm2, %v736_v6 }
 0x141   :  { %623 = vmatmul.mubr.msk.f32.gmra.mrb[4].mxu1 %vm266_vm4, %v247_v12  ;;  %v458_v40 = vpop.permute.xlu1 %457 }
 0x142   :  { %631 = vmatprep.mubr.msk.f32.mxu1 %vm735_vm2, %v736_v6 }
 0x20c   :  { %v346_v13 = vpop.f32.mrb[0].mxu1 }
 0x20d   :  { %v347_v14 = vadd.f32 %v346_v13, %v254_v3  ;;  %v618_v15 = vpop.f32.mrb[1].mxu1 }
 0x20f   :  { %692 = vtanh.f32 %v347_v14 }
 0x210   :  { %v351_v17 = vpop.f32.mrb[2].mxu1 }
 0x211   :  { %v352_v18 = vadd.f32 %v351_v17, %v259_v16  ;;  %v621_v19 = vpop.f32.mrb[3].mxu1 }
 0x213   :  { %694 = vtanh.f32 %v352_v18 }
 0x214   :  { %v356_v21 = vpop.f32.mrb[4].mxu1 }
 0x215   :  { %v357_v22 = vadd.f32 %v356_v21, %v264_v20  ;;  %v624_v23 = vpop.f32.mrb[5].mxu1 }
 0x217   :  { %696 = vtanh.f32 %v357_v22 }
 0x219   :  { %v693_v24 = vpop.eup %692 }
 0x21a   :  { %v363_v25 = vmax.f32 %v693_v24, 0.0 }
 0x21c   :  { %698 = vtanh.f32 %v363_v25 }
 0x21d   :  { %v695_v26 = vpop.eup %694 }
 0x21e   :  { %v364_v27 = vmax.f32 %v695_v26, 0.0 }
 0x220   :  { %700 = vtanh.f32 %v364_v27 }
 0x221   :  { %v697_v28 = vpop.eup %696 }
 0x222   :  { %v365_v29 = vmax.f32 %v697_v28, 0.0 }
 0x224   :  { %702 = vtanh.f32 %v365_v29 }
 0x226   :  { %v699_v30 = vpop.eup %698 }
 0x22a   :  { %v701_v31 = vpop.eup %700 }
 0x22b   :  { %v673_v32 = vpack.c.bf16 %v701_v31, %v699_v30 }
 0x22d   :  { %674 = vmatpush3.bf16.msra.mxu1 %v673_v32 }
 0x22e   :  { %629 = vmatprep.subr.mxu1 %v736_v6  ;;  %v703_v34 = vpop.eup %702  ;;  %v474_v6 = vshrl.u32 %v473_v41, 7 }
 0x230   :  { %v475_v46 = vsub.s32 0, %v474_v6 }
 0x231   :  { %630 = vmatpush3.msk.msra.mxu1 %vm276_vm3, %v703_v34 }
 0x232   :  { %632 = vmatmul.mubr.msk.f32.vlgmr.msra.gmra.mrb[6].mxu1 %vm376_vm5, %v369_v33  ;;  %v476_v50 = vrot.slane %v471_v48, %v475_v46 }
 0x305   :  { %v449_v36 = vpop.f32.mrb[6].mxu1 }
 0x306   :  { %v450_v37 = vadd.f32 %v449_v36, %v374_v35  ;;  %v633_v38 = vpop.f32.mrb[7].mxu1 }
 0x308   :  { %704 = vtanh.f32 %v450_v37 }
 0x312   :  { %v705_v39 = vpop.eup %704 }
 0x313   :  { %v460_v42 = vmul.f32 %v705_v39, %v458_v40 }
 0x315   :  { %v461_v43 = vrot.slane %v460_v42, 4 }
 0x317   :  { %v462_v44 = vadd.f32 %v461_v43, %v460_v42 }
 0x319   :  { %v463_v45 = vrot.slane %v462_v44, 2 }
 0x31b   :  { %v464_v47 = vadd.f32 %v463_v45, %v462_v44 }
 0x31d   :  { %v465_v49 = vrot.slane %v464_v47, 1 }
 0x31f   :  { %v466_v51 = vadd.f32 %v465_v49, %v464_v47 }
 0x321   :  { %v477_v52 = vadd.f32 %v476_v50, %v466_v51 }
 0x323   :  { %v478_v53 = vsub.f32 0.0, %v477_v52 }
 0x325   :  { %v479_v54 = vmul.f32 1.442695, %v478_v53 }
 0x327   :  { %706 = vpow2.f32 %v479_v54 }
 0x331   :  { %v707_v55 = vpop.eup %706 }
 0x332   :  { %v481_v56 = vadd.f32 1.0, %v707_v55 }
 0x334   :  { %708 = vrcp.f32 %v481_v56 }
 0x33e   :  { %v709_v57 = vpop.eup %708 }
 0x33f   :  { %484 = vst [vmem:[#allocation3] sm:$0x1] %v709_v57 }
 0x340   :  { %721 = shalt.err (!%p718_p4)
}
 0x341   :  { %s722_s30 = scalar_lea.hbm %s978_s9, 16 }
 0x342   :  { %p723_p5 = scmp.ne.s32.totalorder %s978_s9, %s722_s30  ;;  %p726_p6 = scmp.lt.u32.totalorder %s722_s30, %s978_s9 }
 0x344   :  { %p728_p7 = pnand %p726_p6, %p723_p5 }
 0x346   :  { %731 = shalt.err (!%p728_p7)
}
 0x347   :  { %494 = dma.vmem_to_hbm [thread:$0]  %s492_s25, 16, %s978_s9, [#allocation4]  }
 0x348   :  { %732 = dma.done.wait [#allocation4], 16  }
 0x349   :  { %733 = vsyncadd [#allocation4], 4294967280 }
 0x34a   :  { %498 = vsyncpa [#allocation4], 1 }

</bundles_post_ra>
